<compile_context>
chip_gen: v7x
topology: tpu7x:2x2x1
jax: 0.10.0
libtpu: 0.0.40
codegen_flags: <defaults>
</compile_context>

<pallas_src>
import functools

import jax
import jax.numpy as jnp
from jax import lax
from jax.experimental import pallas as pl
from jax.experimental.pallas import tpu as pltpu

LANES = 128


def _round_up(n, m):
    return ((n + m - 1) // m) * m


def _chip_setup():
    """(num_cores, max_tile_rows, vmem_limit_bytes) tuned per TPU generation."""
    kind = ""
    try:
        kind = jax.devices()[0].device_kind.lower()
    except Exception:
        pass
    if "v7" in kind or "7x" in kind:
        # 2 TensorCores; 4 MiB f32 blocks; 32 MiB scoped / 64 MiB physical VMEM.
        return 2, 8192, 28 << 20
    if "v6" in kind:
        # 1 TensorCore; 4 MiB blocks well inside 128 MiB physical VMEM.
        return 1, 8192, 28 << 20
    # v5e / older / unknown: stay inside the 16 MiB default scoped VMEM.
    return 1, 4096, None


def _bce_kernel(x_ref, t_ref, o_ref, acc_ref, *, rows, tile_rows, num_cores):
    c = pl.program_id(0)          # core / parallel axis
    k = pl.program_id(1)          # reduction steps per core

    @pl.when(k == 0)
    def _():
        acc_ref[...] = jnp.zeros_like(acc_ref)

    x = x_ref[...].astype(jnp.float32)
    t = t_ref[...].astype(jnp.float32)

    # Numerically-stable BCE with logits (same formulation PyTorch uses):
    #   max(x, 0) - x*t + log1p(exp(-|x|))
    per_elem = jnp.maximum(x, 0.0) - x * t + jnp.log1p(jnp.exp(-jnp.abs(x)))

    def vreg_sum(v):
        # (tile_rows, 128) -> (8, 128): groups whole vregs and adds them on
        # the VPU; no cross-lane work until the finalize step.
        return jnp.sum(v.reshape(tile_rows // 8, 8, LANES), axis=0)

    # Intended (unclamped) block index under the round-robin assignment.
    block_idx = k * num_cores + c
    first_row = block_idx * tile_rows
    is_full = (first_row + tile_rows) <= rows

    @pl.when(is_full)
    def _():
        # Hot path: fully-valid interior block, no masking at all.
        acc_ref[...] += vreg_sum(per_elem)

    @pl.when(jnp.logical_not(is_full))
    def _():
        # Partial last block or a fully-masked clamped duplicate.  Row-level
        # compare (no flat element index -> no int32 overflow).
        rem = rows - first_row                      # <= 0 for duplicates
        row_ids = lax.broadcasted_iota(jnp.int32, (tile_rows, LANES), 0)
        acc_ref[...] += vreg_sum(jnp.where(row_ids < rem, per_elem, 0.0))

    @pl.when(k == pl.num_programs(1) - 1)
    def _():
        partial = jnp.sum(acc_ref[...])
        # Broadcast the per-core partial over its (8, 128) output block; the
        # wrapper reads one lane per core.
        o_ref[...] = jnp.full(o_ref.shape, partial, dtype=o_ref.dtype)


def bce_with_logits_loss(x, target):
    """Mean-reduced BCEWithLogitsLoss (weight=None) via a Pallas TPU kernel."""
    assert x.shape == target.shape
    n_valid = int(x.size)
    if n_valid == 0:
        return jnp.float32(jnp.nan)

    flat_x = jnp.ravel(x)
    flat_t = jnp.ravel(target)

    rows = n_valid // LANES
    tail = n_valid - rows * LANES

    # <128-element ragged tail handled in plain JAX (negligible), so the
    # kernel only ever sees a lane-dense (rows, 128) slab — no pad copies.
    tail_sum = jnp.float32(0.0)
    if tail:
        tx = flat_x[rows * LANES:].astype(jnp.float32)
        tt = flat_t[rows * LANES:].astype(jnp.float32)
        tail_sum = jnp.sum(
            jnp.maximum(tx, 0.0) - tx * tt + jnp.log1p(jnp.exp(-jnp.abs(tx)))
        )

    if rows == 0:
        return tail_sum / n_valid

    if tail:
        flat_x = lax.slice(flat_x, (0,), (rows * LANES,))
        flat_t = lax.slice(flat_t, (0,), (rows * LANES,))
    x2 = flat_x.reshape(rows, LANES)   # free bitcast when tail == 0
    t2 = flat_t.reshape(rows, LANES)

    num_cores, max_tile_rows, vmem_limit = _chip_setup()

    # Sublane multiple: 16 for packed 16-bit dtypes, 8 otherwise.
    min_itemsize = min(jnp.dtype(x.dtype).itemsize, jnp.dtype(target.dtype).itemsize)
    mult = 16 if min_itemsize < 4 else 8

    tile_rows = max(mult, min(max_tile_rows, _round_up(rows, mult)))
    num_blocks = pl.cdiv(rows, tile_rows)
    if num_blocks < 2:
        num_cores = 1                      # no point splitting a single block
    steps = pl.cdiv(num_blocks, num_cores)
    needs_clamp = num_cores * steps > num_blocks

    def in_map(c, k):
        b = k * num_cores + c              # round-robin block assignment
        if needs_clamp:
            b = jnp.minimum(b, num_blocks - 1)
        return (b, 0)

    kernel = functools.partial(
        _bce_kernel, rows=rows, tile_rows=tile_rows, num_cores=num_cores
    )

    cp_kwargs = dict(dimension_semantics=("parallel", "arbitrary"))
    if vmem_limit is not None:
        cp_kwargs["vmem_limit_bytes"] = vmem_limit

    out = pl.pallas_call(
        kernel,
        out_shape=jax.ShapeDtypeStruct((num_cores * 8, LANES), jnp.float32),
        grid_spec=pltpu.PrefetchScalarGridSpec(
            num_scalar_prefetch=0,
            grid=(num_cores, steps),
            in_specs=[
                pl.BlockSpec((tile_rows, LANES), in_map),
                pl.BlockSpec((tile_rows, LANES), in_map),
            ],
            out_specs=pl.BlockSpec((8, LANES), lambda c, k: (c, 0)),
            scratch_shapes=[pltpu.VMEM((8, LANES), jnp.float32)],
        ),
        compiler_params=pltpu.CompilerParams(**cp_kwargs),
    )(x2, t2)

    # One partial per core (row c*8, lane 0); add the JAX-side tail and scale
    # by the static 1/N (no runtime divide in the kernel).
    partials = out[::8, 0]
    total = jnp.sum(partials) + tail_sum
    return total * (1.0 / n_valid)


if __name__ == "__main__":
    key = jax.random.PRNGKey(0)
    kx, kt = jax.random.split(key)

    # NCHW logits, targets in [0, 1] — small shape consistent with the module.
    x = jax.random.normal(kx, (2, 4, 16, 16), dtype=jnp.float32)
    target = jax.random.uniform(kt, (2, 4, 16, 16), dtype=jnp.float32)

    loss = jax.block_until_ready(bce_with_logits_loss(x, target))
    ref = jnp.mean(
        jnp.maximum(x, 0.0) - x * target + jnp.log1p(jnp.exp(-jnp.abs(x)))
    )
    assert jnp.allclose(loss, ref, rtol=1e-5, atol=1e-5), (loss, ref)

    # Non-lane-aligned size: exercises the masked partial-block path and the
    # plain-JAX tail path.
    x2 = jax.random.normal(kx, (3, 11, 53), dtype=jnp.float32)
    t2 = jax.random.uniform(kt, (3, 11, 53), dtype=jnp.float32)
    loss2 = jax.block_until_ready(bce_with_logits_loss(x2, t2))
    ref2 = jnp.mean(
        jnp.maximum(x2, 0.0) - x2 * t2 + jnp.log1p(jnp.exp(-jnp.abs(x2)))
    )
    assert jnp.allclose(loss2, ref2, rtol=1e-5, atol=1e-5), (loss2, ref2)

    print("KERNEL_OK")
</pallas_src>

<mosaic_0001>
module attributes {stable_mosaic.version = 11 : i64} {
  func.func @_bce_kernel(%arg0: i32, %arg1: i32, %arg2: memref<16x128xf32, #tpu.memory_space<vmem>>, %arg3: memref<16x128xf32, #tpu.memory_space<vmem>>, %arg4: memref<8x128xf32, #tpu.memory_space<vmem>>, %arg5: memref<8x128xf32, #tpu.memory_space<vmem>>) attributes {dimension_semantics = [#tpu.dimension_semantics<parallel>, #tpu.dimension_semantics<arbitrary>], iteration_bounds = array<i64: 1, 1>, scalar_prefetch = 0 : i64, scratch_operands = 1 : i64, tpu.core_type = #tpu.core_type<tc>, window_params = [{transform_indices = @transform_0, window_bounds = array<i64: 16, 128>}, {transform_indices = @transform_1, window_bounds = array<i64: 16, 128>}, {transform_indices = @transform_2, window_bounds = array<i64: 8, 128>}]} {
    %c0_i32 = arith.constant 0 : i32
    %0 = arith.cmpi eq, %arg1, %c0_i32 : i32
    %1 = arith.extui %0 : i1 to i32
    %c0_i32_0 = arith.constant 0 : i32
    %2 = arith.cmpi ne, %1, %c0_i32_0 : i32
    scf.if %2 {
      %cst_11 = arith.constant 0.000000e+00 : f32
      %28 = vector.broadcast %cst_11 : f32 to vector<8x128xf32>
      %c0_12 = arith.constant 0 : index
      %c0_13 = arith.constant 0 : index
      %29 = vector.load %arg5[%c0_12, %c0_13] : memref<8x128xf32, #tpu.memory_space<vmem>>, vector<8x128xf32>
      tpu.vector_store %arg5[%c0_12, %c0_13], %28 {strides = array<i32>} : memref<8x128xf32, #tpu.memory_space<vmem>>, vector<8x128xf32>,
    } else {
    }
    %c0 = arith.constant 0 : index
    %c0_1 = arith.constant 0 : index
    %3 = vector.load %arg2[%c0, %c0_1] : memref<16x128xf32, #tpu.memory_space<vmem>>, vector<16x128xf32>
    %c0_2 = arith.constant 0 : index
    %c0_3 = arith.constant 0 : index
    %4 = vector.load %arg3[%c0_2, %c0_3] : memref<16x128xf32, #tpu.memory_space<vmem>>, vector<16x128xf32>
    %cst = arith.constant 0.000000e+00 : f32
    %5 = vector.broadcast %cst : f32 to vector<16x128xf32>
    %6 = arith.maximumf %3, %5 : vector<16x128xf32>
    %7 = arith.mulf %3, %4 : vector<16x128xf32>
    %8 = arith.subf %6, %7 : vector<16x128xf32>
    %9 = math.absf %3 : vector<16x128xf32>
    %cst_4 = arith.constant 0.000000e+00 : f32
    %10 = vector.broadcast %cst_4 : f32 to vector<16x128xf32>
    %11 = arith.subf %10, %9 : vector<16x128xf32>
    %12 = math.exp %11 : vector<16x128xf32>
    %13 = math.log1p %12 : vector<16x128xf32>
    %14 = arith.addf %8, %13 : vector<16x128xf32>
    %c1_i32 = arith.constant 1 : i32
    %15 = arith.muli %arg1, %c1_i32 : i32
    %16 = arith.addi %15, %arg0 : i32
    %c16_i32 = arith.constant 16 : i32
    %17 = arith.muli %16, %c16_i32 : i32
    %c16_i32_5 = arith.constant 16 : i32
    %18 = arith.addi %17, %c16_i32_5 : i32
    %c16_i32_6 = arith.constant 16 : i32
    %19 = arith.cmpi sle, %18, %c16_i32_6 : i32
    %20 = arith.extui %19 : i1 to i32
    %c0_i32_7 = arith.constant 0 : i32
    %21 = arith.cmpi ne, %20, %c0_i32_7 : i32
    scf.if %21 {
      %c0_11 = arith.constant 0 : index
      %c0_12 = arith.constant 0 : index
      %28 = vector.load %arg5[%c0_11, %c0_12] : memref<8x128xf32, #tpu.memory_space<vmem>>, vector<8x128xf32>
      %29 = vector.shape_cast %14 : vector<16x128xf32> to vector<2x8x128xf32>
      %cst_13 = arith.constant dense<0.000000e+00> : vector<8x128xf32>
      %30 = vector.multi_reduction <add>, %29, %cst_13 [0] : vector<2x8x128xf32> to vector<8x128xf32>
      %31 = arith.addf %28, %30 : vector<8x128xf32>
      %c0_14 = arith.constant 0 : index
      %c0_15 = arith.constant 0 : index
      %32 = vector.load %arg5[%c0_14, %c0_15] : memref<8x128xf32, #tpu.memory_space<vmem>>, vector<8x128xf32>
      tpu.vector_store %arg5[%c0_14, %c0_15], %31 {strides = array<i32>} : memref<8x128xf32, #tpu.memory_space<vmem>>, vector<8x128xf32>,
    } else {
    }
    %true = arith.constant true
    %22 = arith.xori %19, %true : i1
    %23 = arith.extui %22 : i1 to i32
    %c0_i32_8 = arith.constant 0 : i32
    %24 = arith.cmpi ne, %23, %c0_i32_8 : i32
    scf.if %24 {
      %c16_i32_11 = arith.constant 16 : i32
      %28 = arith.subi %c16_i32_11, %17 : i32
      %29 = tpu.iota {dimensions = array<i32: 0>} : vector<16x128xi32>
      %c0_12 = arith.constant 0 : index
      %c0_13 = arith.constant 0 : index
      %30 = vector.load %arg5[%c0_12, %c0_13] : memref<8x128xf32, #tpu.memory_space<vmem>>, vector<8x128xf32>
      %31 = vector.broadcast %28 : i32 to vector<16x128xi32>
      %32 = arith.cmpi slt, %29, %31 : vector<16x128xi32>
      %cst_14 = arith.constant 0.000000e+00 : f32
      %33 = vector.broadcast %cst_14 : f32 to vector<16x128xf32>
      %34 = arith.select %32, %14, %33 : vector<16x128xi1>, vector<16x128xf32>
      %35 = vector.shape_cast %34 : vector<16x128xf32> to vector<2x8x128xf32>
      %cst_15 = arith.constant dense<0.000000e+00> : vector<8x128xf32>
      %36 = vector.multi_reduction <add>, %35, %cst_15 [0] : vector<2x8x128xf32> to vector<8x128xf32>
      %37 = arith.addf %30, %36 : vector<8x128xf32>
      %c0_16 = arith.constant 0 : index
      %c0_17 = arith.constant 0 : index
      %38 = vector.load %arg5[%c0_16, %c0_17] : memref<8x128xf32, #tpu.memory_space<vmem>>, vector<8x128xf32>
      tpu.vector_store %arg5[%c0_16, %c0_17], %37 {strides = array<i32>} : memref<8x128xf32, #tpu.memory_space<vmem>>, vector<8x128xf32>,
    } else {
    }
    %c0_i32_9 = arith.constant 0 : i32
    %25 = arith.cmpi eq, %arg1, %c0_i32_9 : i32
    %26 = arith.extui %25 : i1 to i32
    %c0_i32_10 = arith.constant 0 : i32
    %27 = arith.cmpi ne, %26, %c0_i32_10 : i32
    scf.if %27 {
      %c0_11 = arith.constant 0 : index
      %c0_12 = arith.constant 0 : index
      %28 = vector.load %arg5[%c0_11, %c0_12] : memref<8x128xf32, #tpu.memory_space<vmem>>, vector<8x128xf32>
      %29 = vector.shape_cast %28 : vector<8x128xf32> to vector<1x8x128xf32>
      %cst_13 = arith.constant dense<0.000000e+00> : vector<1xf32>
      %30 = vector.multi_reduction <add>, %29, %cst_13 [1, 2] : vector<1x8x128xf32> to vector<1xf32>
      %31 = vector.shape_cast %30 : vector<1xf32> to vector<1x1x1xf32>
      %32 = vector.extract %31[0, 0, 0] : f32 from vector<1x1x1xf32>
      %33 = vector.broadcast %32 : f32 to vector<8x128xf32>
      %c0_14 = arith.constant 0 : index
      %c0_15 = arith.constant 0 : index
      %34 = vector.load %arg4[%c0_14, %c0_15] : memref<8x128xf32, #tpu.memory_space<vmem>>, vector<8x128xf32>
      tpu.vector_store %arg4[%c0_14, %c0_15], %33 {strides = array<i32>} : memref<8x128xf32, #tpu.memory_space<vmem>>, vector<8x128xf32>,
    } else {
    }
    return
  }
  func.func @transform_0(%arg0: i32, %arg1: i32) -> (i32, i32) {
    %c1_i32 = arith.constant 1 : i32
    %0 = arith.muli %arg1, %c1_i32 : i32
    %1 = arith.addi %0, %arg0 : i32
    %c0_i32 = arith.constant 0 : i32
    %c0_i32_0 = arith.constant 0 : i32
    return %1, %c0_i32 : i32, i32
  }
  func.func @transform_1(%arg0: i32, %arg1: i32) -> (i32, i32) {
    %c1_i32 = arith.constant 1 : i32
    %0 = arith.muli %arg1, %c1_i32 : i32
    %1 = arith.addi %0, %arg0 : i32
    %c0_i32 = arith.constant 0 : i32
    %c0_i32_0 = arith.constant 0 : i32
    return %1, %c0_i32 : i32, i32
  }
  func.func @transform_2(%arg0: i32, %arg1: i32) -> (i32, i32) {
    %c0_i32 = arith.constant 0 : i32
    %c0_i32_0 = arith.constant 0 : i32
    return %arg0, %c0_i32 : i32, i32
  }
}

</mosaic_0001>

<bundles_post_ra>
// kernel: tpu_custom_call.1
= control target key start
LH: loop header
LB: loop body
LE: loop exit
PB: predicated region body
PF: predicated region fallthrough
CT: control target
= control target key end

     0   :  { %7 = vsyncpa [#allocation4], 0  ;;  %s297_s0 = inlined_call_operand.hbm [shape: f32[16,128], index: 0, kind: input, shape index: {}]   ;;  %s298_s1 = inlined_call_operand.hbm [shape: f32[16,128], index: 1, kind: input, shape index: {}]   ;;  %s299_s2 = inlined_call_operand.hbm [shape: f32[8,128], index: 2, kind: output, shape index: {}]  }
   0x1   :  { %8 = vsyncpa [#allocation7], 0 }
   0x2   :  { %9 = vsyncpa [#allocation5], 0  ;;  %s241_s9 = smov [#allocation3]   ;;  %s169_s13 = scalar_lea.hbm %s297_s0, 256 }
   0x3   :  { %s19_s10 = sshll.u32 %s241_s9, 4  ;;  %p170_p0 = scmp.ne.s32.totalorder %s297_s0, %s169_s13  ;;  %s20_s10 = int_to_ptr.vmem [resolvable:$true] %s19_s10 }
   0x4   :  { %p173_p1 = scmp.lt.u32.totalorder %s169_s13, %s297_s0 }
   0x6   :  { %p175_p2 = pnand %p173_p1, %p170_p0 }
   0x8   :  { %178 = shalt.err (!%p175_p2)
}
   0x9   :  { %s179_s18 = scalar_lea.vmem %s20_s10, 256  ;;  %p184_p4 = scmp.lt.s32.totalorder %s20_s10, %s20_s10 }
   0xa   :  { %p180_p3 = scmp.ne.s32.totalorder %s20_s10, %s179_s18  ;;  %p185_p5 = scmp.lt.s32.totalorder %s179_s18, %s179_s18 }
   0xc   :  { %p186_p6 = por %p185_p5, %p184_p4 }
   0xe   :  { %p187_p7 = pnand %p186_p6, %p180_p3 }
  0x10   :  { %190 = shalt.err (!%p187_p7)
}
  0x11   :  { %s242_s19 = smov 128   ;;  %s243_s20 = smov 8  }
  0x12   :  { %25 = dma.hbm_to_vmem [thread:$0]  %s297_s0, 256, %s20_s10, [#allocation4], %s242_s19, %s242_s19, %s243_s20  }
  0x13   :  { %s244_s23 = smov [#allocation6]   ;;  %s191_s27 = scalar_lea.hbm %s298_s1, 256 }
  0x14   :  { %s35_s24 = sshll.u32 %s244_s23, 4  ;;  %p192_p8 = scmp.ne.s32.totalorder %s298_s1, %s191_s27  ;;  %s36_s24 = int_to_ptr.vmem [resolvable:$true] %s35_s24 }
  0x15   :  { %p195_p9 = scmp.lt.u32.totalorder %s191_s27, %s298_s1 }
  0x17   :  { %p197_p10 = pnand %p195_p9, %p192_p8 }
  0x19   :  { %200 = shalt.err (!%p197_p10)
}
  0x1a   :  { %s201_s4 = scalar_lea.vmem %s36_s24, 256  ;;  %p206_p12 = scmp.lt.s32.totalorder %s36_s24, %s36_s24 }
  0x1b   :  { %p202_p11 = scmp.ne.s32.totalorder %s36_s24, %s201_s4  ;;  %p207_p13 = scmp.lt.s32.totalorder %s201_s4, %s201_s4 }
  0x1d   :  { %p208_p0 = por %p207_p13, %p206_p12 }
  0x1f   :  { %p209_p1 = pnand %p208_p0, %p202_p11 }
  0x21   :  { %212 = shalt.err (!%p209_p1)
}
  0x22   :  { %41 = dma.hbm_to_vmem [thread:$0]  %s298_s1, 256, %s36_s24, [#allocation7], %s242_s19, %s242_s19, %s243_s20  }
  0x23   :  { %235 = dma.done.wait [#allocation4], 256  }
  0x24   :  { %236 = vsyncadd [#allocation4], 4294967040 }
  0x25   :  { %237 = dma.done.wait [#allocation7], 256  }
  0x26   :  { %238 = vsyncadd [#allocation7], 4294967040  ;;  %v57_v0 = vld [vmem:[#allocation3] sm:$0xff]  ;;  %v58_v1 = vld [vmem:[#allocation3 + $0x8] sm:$0xff]  ;;  %s245_s1 = smov [#allocation8]  }
  0x27   :  { %v67_v2 = vand.u32 2147483647, %v57_v0  ;;  %v68_v3 = vand.u32 2147483647, %v58_v1  ;;  %v59_v14 = vld [vmem:[#allocation6] sm:$0xff]  ;;  %v60_v15 = vld [vmem:[#allocation6 + $0x8] sm:$0xff] }
  0x28   :  { %v61_v17 = vmax.f32 %v57_v0, 0.0  ;;  %v63_v18 = vmul.f32 %v59_v14, %v57_v0  ;;  %v62_v21 = vmax.f32 %v58_v1, 0.0  ;;  %v64_v22 = vmul.f32 %v60_v15, %v58_v1  ;;  %s144_s6 = sshll.u32 %s245_s1, 4  ;;  %s145_s6 = int_to_ptr.vmem [resolvable:$true] %s144_s6 }
  0x29   :  { %v69_v4 = vsub.f32 0.0, %v67_v2  ;;  %v70_v5 = vsub.f32 0.0, %v68_v3  ;;  %s213_s8 = scalar_lea.vmem %s145_s6, 128  ;;  %p218_p3 = scmp.lt.s32.totalorder %s145_s6, %s145_s6 }
  0x2a   :  { %v65_v26 = vsub.f32 %v61_v17, %v63_v18  ;;  %v66_v29 = vsub.f32 %v62_v21, %v64_v22  ;;  %p214_p2 = scmp.ne.s32.totalorder %s145_s6, %s213_s8  ;;  %p219_p4 = scmp.lt.s32.totalorder %s213_s8, %s213_s8 }
  0x2b   :  { %v71_v6 = vmul.f32 1.442695, %v69_v4  ;;  %v73_v7 = vmul.f32 1.442695, %v70_v5 }
  0x2c   :  { %p220_p5 = por %p219_p4, %p218_p3 }
  0x2d   :  { %161 = vpow2.f32 %v71_v6 }
  0x2e   :  { %163 = vpow2.f32 %v73_v7  ;;  %p221_p6 = pnand %p220_p5, %p214_p2 }
  0x37   :  { %v162_v8 = vpop.eup %161 }
  0x38   :  { %v164_v9 = vpop.eup %163  ;;  %v75_v10 = vadd.f32 1.0, %v162_v8  ;;  %v78_v12 = vmul.f32 -0.5, %v162_v8  ;;  %v81_v19 = vand.u32 2147483647, %v162_v8 }
  0x39   :  { %v84_v11 = vadd.f32 1.0, %v164_v9  ;;  %v87_v13 = vmul.f32 -0.5, %v164_v9  ;;  %v90_v23 = vand.u32 2147483647, %v164_v9 }
  0x3a   :  { %165 = vlog2.f32 %v75_v10  ;;  %v79_v16 = vadd.f32 1.0, %v78_v12  ;;  %vm82_vm0 = vcmp.lt.f32.partialorder %v81_v19, 0.0004427343 }
  0x3b   :  { %167 = vlog2.f32 %v84_v11  ;;  %v88_v20 = vadd.f32 1.0, %v87_v13  ;;  %vm91_vm1 = vcmp.lt.f32.partialorder %v90_v23, 0.0004427343 }
  0x3c   :  { %v80_v24 = vmul.f32 %v162_v8, %v79_v16 }
  0x3d   :  { %v89_v27 = vmul.f32 %v164_v9, %v88_v20 }
  0x44   :  { %v166_v25 = vpop.eup %165 }
  0x45   :  { %v168_v28 = vpop.eup %167  ;;  %v77_v30 = vmul.f32 0.6931472, %v166_v25 }
  0x46   :  { %v86_v31 = vmul.f32 0.6931472, %v168_v28 }
  0x47   :  { %v83_v32 = vsel %vm82_vm0, %v80_v24, %v77_v30 }
  0x48   :  { %v92_v33 = vsel %vm91_vm1, %v89_v27, %v86_v31  ;;  %v93_v34 = vadd.f32 %v83_v32, %v65_v26 }
  0x49   :  { %v94_v35 = vadd.f32 %v92_v33, %v66_v29 }
  0x4b   :  { %v103_v36 = vadd.f32 %v94_v35, %v93_v34 }
  0x4d   :  { %127 = vadd.xlane.f32.xlu0 %v103_v36 }
  0xda   :  { %v128_v37 = vpop.xlane.xlu0 %127 }
  0xdb   :  { %v129_v38 = vrot.slane %v128_v37, 4 }
  0xdd   :  { %v130_v39 = vadd.f32 %v129_v38, %v128_v37 }
  0xdf   :  { %v131_v40 = vrot.slane %v130_v39, 2 }
  0xe1   :  { %v132_v41 = vadd.f32 %v131_v40, %v130_v39 }
  0xe3   :  { %v133_v42 = vrot.slane %v132_v41, 1 }
  0xe5   :  { %v134_v43 = vadd.f32 %v133_v42, %v132_v41 }
  0xe7   :  { %154 = vpush %v134_v43 }
 0x118   :  { %s155_s7 = spop %154 }
 0x119   :  { %v136_v44 = vstv %s155_s7 }
 0x11a   :  { %137 = vst [vmem:[#allocation8] sm:$0xff] %v136_v44 }
 0x11b   :  { %224 = shalt.err (!%p221_p6)
}
 0x11c   :  { %s225_s11 = scalar_lea.hbm %s299_s2, 128 }
 0x11d   :  { %p226_p7 = scmp.ne.s32.totalorder %s299_s2, %s225_s11  ;;  %p229_p8 = scmp.lt.u32.totalorder %s225_s11, %s299_s2 }
 0x11f   :  { %p231_p9 = pnand %p229_p8, %p226_p7 }
 0x121   :  { %234 = shalt.err (!%p231_p9)
}
 0x122   :  { %147 = dma.vmem_to_hbm [thread:$0]  %s145_s6, 128, %s299_s2, [#allocation5]  }
 0x123   :  { %239 = dma.done.wait [#allocation5], 128  }
 0x124   :  { %240 = vsyncadd [#allocation5], 4294967168 }
 0x125   :  { %151 = vsyncpa [#allocation4], 1 }
 0x126   :  { %152 = vsyncpa [#allocation7], 1 }
 0x127   :  { %153 = vsyncpa [#allocation5], 1 }

</bundles_post_ra>
